<compile_context>
chip_gen: v5e
topology: v5e:2x2
jax: 0.10.0
libtpu: 0.0.40
codegen_flags: <defaults>
</compile_context>

<pallas_src>
import functools

import jax
import jax.numpy as jnp
from jax.experimental import pallas as pl
from jax.experimental.pallas import tpu as pltpu

OBS_DIM = 4       # ContinuousCartPole-v0 observation_space.shape == (4,)
ACT_DIM = 1       # action_space.shape[0] == 1  -> final layer out = 2
H1, H2 = 64, 32
OUT_DIM = 2 * ACT_DIM


def _round_up(n, m):
    return ((n + m - 1) // m) * m


def actor_kernel(x_ref, w1_ref, b1_ref, w2_ref, b2_ref, w3_ref, b3_ref,
                 out_ref):
    x = x_ref[...]                                                   # (obs, TB)
    h1 = jnp.tanh(
        jnp.dot(w1_ref[...], x, preferred_element_type=jnp.float32)
        + b1_ref[...])                                               # (64, TB)
    h2 = jnp.tanh(
        jnp.dot(w2_ref[...], h1, preferred_element_type=jnp.float32)
        + b2_ref[...])                                               # (32, TB)
    out = (jnp.dot(w3_ref[...], h2, preferred_element_type=jnp.float32)
           + b3_ref[...])                                            # (2, TB)
    # Lane-dense stores; exp only on the log-std row(s).
    out_ref[0:ACT_DIM, :] = out[0:ACT_DIM, :]
    out_ref[ACT_DIM:OUT_DIM, :] = jnp.exp(out[ACT_DIM:OUT_DIM, :])


@functools.partial(jax.jit, static_argnames=("max_tile",))
def actor_forward(x, params, *, max_tile=8192):
    """x: (B, OBS_DIM) f32 -> (means, stds), each (B, ACT_DIM) f32."""
    w1, b1, w2, b2, w3, b3 = params
    B = x.shape[0]

    # Batch tile on the lane axis (multiple of 128).  Per-tile VMEM at
    # tb=8192 is ~3.5 MiB (x 128KBx2, out 64KBx2, h1 2MB, h2 1MB, weights
    # ~20KB) -- comfortably inside every chip's scoped VMEM, so the cap is
    # 8192 lanes.  When the padded batch has >= 2 full 128-lane tiles we
    # force at least 2 grid steps so v7x's two TensorCores both get work.
    b128 = _round_up(max(B, 1), 128)
    if b128 >= 256:
        tb = min(max_tile, _round_up((b128 + 1) // 2, 128))
    else:
        tb = b128
    b_pad = _round_up(b128, tb)
    grid = (b_pad // tb,)

    # Single feature-major pad+transpose (no extra copies); pad columns are
    # zeros, computed and discarded.  (Keeping batch on lanes avoids the
    # 4-wide-minor-dim strided DMA a (tb, OBS_DIM) layout would cause.)
    x_t = jnp.pad(x.T, ((0, 0), (0, b_pad - B)))

    weight_bytes = 4 * (OBS_DIM * H1 + H1 + H1 * H2 + H2
                        + H2 * OUT_DIM + OUT_DIM)
    cost = pl.CostEstimate(
        flops=2 * b_pad * (OBS_DIM * H1 + H1 * H2 + H2 * OUT_DIM),
        transcendentals=b_pad * (H1 + H2 + ACT_DIM),
        bytes_accessed=4 * b_pad * (OBS_DIM + OUT_DIM) + weight_bytes,
    )

    def resident(shape):
        # Constant index_map: DMA'd once, stays VMEM-resident across tiles.
        return pl.BlockSpec(shape, lambda i: (0, 0))

    out = pl.pallas_call(
        actor_kernel,
        out_shape=jax.ShapeDtypeStruct((OUT_DIM, b_pad), jnp.float32),
        grid=grid,
        in_specs=[
            pl.BlockSpec((OBS_DIM, tb), lambda i: (0, i)),    # x tile
            resident((H1, OBS_DIM)),                          # w1
            resident((H1, 1)),                                # b1
            resident((H2, H1)),                               # w2
            resident((H2, 1)),                                # b2
            resident((OUT_DIM, H2)),                          # w3
            resident((OUT_DIM, 1)),                           # b3
        ],
        out_specs=pl.BlockSpec((OUT_DIM, tb), lambda i: (0, i)),
        compiler_params=pltpu.CompilerParams(
            dimension_semantics=("parallel",)),
        cost_estimate=cost,
    )(x_t, w1, b1, w2, b2, w3, b3)

    # One slice + transpose, then split columns.
    res = out[:, :B].T                                        # (B, OUT_DIM)
    means = res[:, 0:ACT_DIM]
    stds = res[:, ACT_DIM:OUT_DIM]
    return means, stds


def init_params(key):
    """Torch-layout params: w (out, in), b (out, 1), U(-1/sqrt(fan_in), +)."""
    def linear(key, fan_in, fan_out):
        kw, kb = jax.random.split(key)
        bound = 1.0 / jnp.sqrt(float(fan_in))
        w = jax.random.uniform(kw, (fan_out, fan_in), jnp.float32, -bound, bound)
        b = jax.random.uniform(kb, (fan_out, 1), jnp.float32, -bound, bound)
        return w, b

    k1, k2, k3 = jax.random.split(key, 3)
    w1, b1 = linear(k1, OBS_DIM, H1)
    w2, b2 = linear(k2, H1, H2)
    w3, b3 = linear(k3, H2, OUT_DIM)
    return (w1, b1, w2, b2, w3, b3)


def reference_forward(x, params):
    w1, b1, w2, b2, w3, b3 = params
    h1 = jnp.tanh(x @ w1.T + b1.T)
    h2 = jnp.tanh(h1 @ w2.T + b2.T)
    out = h2 @ w3.T + b3.T
    return out[:, 0:ACT_DIM], jnp.exp(out[:, ACT_DIM:OUT_DIM])


if __name__ == "__main__":
    key = jax.random.PRNGKey(0)
    kp, kx = jax.random.split(key)
    params = init_params(kp)

    B = 8
    x = jax.random.normal(kx, (B, OBS_DIM), jnp.float32)

    means, stds = actor_forward(x, params)
    jax.block_until_ready((means, stds))

    ref_means, ref_stds = reference_forward(x, params)
    assert means.shape == (B, ACT_DIM) and stds.shape == (B, ACT_DIM)
    assert jnp.allclose(means, ref_means, atol=1e-5, rtol=1e-5)
    assert jnp.allclose(stds, ref_stds, atol=1e-5, rtol=1e-5)

    # Exercise a multi-tile batch (grid >= 2, padding path) as well.
    B2 = 300
    x2 = jax.random.normal(kx, (B2, OBS_DIM), jnp.float32)
    m2, s2 = actor_forward(x2, params)
    jax.block_until_ready((m2, s2))
    rm2, rs2 = reference_forward(x2, params)
    assert jnp.allclose(m2, rm2, atol=1e-5, rtol=1e-5)
    assert jnp.allclose(s2, rs2, atol=1e-5, rtol=1e-5)

    print("KERNEL_OK")
</pallas_src>

<mosaic_0001>
module attributes {stable_mosaic.version = 11 : i64} {
  func.func @actor_kernel(%arg0: i32, %arg1: memref<4x128xf32, #tpu.memory_space<vmem>>, %arg2: memref<64x4xf32, #tpu.memory_space<vmem>>, %arg3: memref<64x1xf32, #tpu.memory_space<vmem>>, %arg4: memref<32x64xf32, #tpu.memory_space<vmem>>, %arg5: memref<32x1xf32, #tpu.memory_space<vmem>>, %arg6: memref<2x32xf32, #tpu.memory_space<vmem>>, %arg7: memref<2x1xf32, #tpu.memory_space<vmem>>, %arg8: memref<2x128xf32, #tpu.memory_space<vmem>>) attributes {dimension_semantics = [#tpu.dimension_semantics<parallel>], iteration_bounds = array<i64: 1>, scalar_prefetch = 0 : i64, scratch_operands = 0 : i64, tpu.core_type = #tpu.core_type<tc>, window_params = [{transform_indices = @transform_0, window_bounds = array<i64: 4, 128>}, {pipeline_mode = #tpu.pipeline_mode<synchronous>, transform_indices = @transform_1, window_bounds = array<i64: 64, 4>}, {pipeline_mode = #tpu.pipeline_mode<synchronous>, transform_indices = @transform_2, window_bounds = array<i64: 64, 1>}, {pipeline_mode = #tpu.pipeline_mode<synchronous>, transform_indices = @transform_3, window_bounds = array<i64: 32, 64>}, {pipeline_mode = #tpu.pipeline_mode<synchronous>, transform_indices = @transform_4, window_bounds = array<i64: 32, 1>}, {pipeline_mode = #tpu.pipeline_mode<synchronous>, transform_indices = @transform_5, window_bounds = array<i64: 2, 32>}, {pipeline_mode = #tpu.pipeline_mode<synchronous>, transform_indices = @transform_6, window_bounds = array<i64: 2, 1>}, {transform_indices = @transform_7, window_bounds = array<i64: 2, 128>}]} {
    %c0 = arith.constant 0 : index
    %c0_0 = arith.constant 0 : index
    %0 = vector.load %arg1[%c0, %c0_0] : memref<4x128xf32, #tpu.memory_space<vmem>>, vector<4x128xf32>
    %c0_1 = arith.constant 0 : index
    %c0_2 = arith.constant 0 : index
    %1 = vector.load %arg2[%c0_1, %c0_2] : memref<64x4xf32, #tpu.memory_space<vmem>>, vector<64x4xf32>
    %cst = arith.constant dense<0.000000e+00> : vector<64x128xf32>
    %2 = tpu.matmul %1, %0, %cst {dimension_numbers = #tpu.dot_dimension_numbers<[1], [0], [0], [1], [0, 0, 1, 1], [], []>} : vector<64x4xf32>, vector<4x128xf32>, vector<64x128xf32> -> vector<64x128xf32>
    %c0_3 = arith.constant 0 : index
    %c0_4 = arith.constant 0 : index
    %3 = vector.load %arg3[%c0_3, %c0_4] : memref<64x1xf32, #tpu.memory_space<vmem>>, vector<64x1xf32>
    %4 = vector.broadcast %3 : vector<64x1xf32> to vector<64x128xf32>
    %5 = arith.addf %2, %4 : vector<64x128xf32>
    %6 = math.tanh %5 : vector<64x128xf32>
    %c0_5 = arith.constant 0 : index
    %c0_6 = arith.constant 0 : index
    %7 = vector.load %arg4[%c0_5, %c0_6] : memref<32x64xf32, #tpu.memory_space<vmem>>, vector<32x64xf32>
    %cst_7 = arith.constant dense<0.000000e+00> : vector<32x128xf32>
    %8 = tpu.matmul %7, %6, %cst_7 {dimension_numbers = #tpu.dot_dimension_numbers<[1], [0], [0], [1], [0, 0, 1, 1], [], []>} : vector<32x64xf32>, vector<64x128xf32>, vector<32x128xf32> -> vector<32x128xf32>
    %c0_8 = arith.constant 0 : index
    %c0_9 = arith.constant 0 : index
    %9 = vector.load %arg5[%c0_8, %c0_9] : memref<32x1xf32, #tpu.memory_space<vmem>>, vector<32x1xf32>
    %10 = vector.broadcast %9 : vector<32x1xf32> to vector<32x128xf32>
    %11 = arith.addf %8, %10 : vector<32x128xf32>
    %12 = math.tanh %11 : vector<32x128xf32>
    %c0_10 = arith.constant 0 : index
    %c0_11 = arith.constant 0 : index
    %13 = vector.load %arg6[%c0_10, %c0_11] : memref<2x32xf32, #tpu.memory_space<vmem>>, vector<2x32xf32>
    %cst_12 = arith.constant dense<0.000000e+00> : vector<2x128xf32>
    %14 = tpu.matmul %13, %12, %cst_12 {dimension_numbers = #tpu.dot_dimension_numbers<[1], [0], [0], [1], [0, 0, 1, 1], [], []>} : vector<2x32xf32>, vector<32x128xf32>, vector<2x128xf32> -> vector<2x128xf32>
    %c0_13 = arith.constant 0 : index
    %c0_14 = arith.constant 0 : index
    %15 = vector.load %arg7[%c0_13, %c0_14] : memref<2x1xf32, #tpu.memory_space<vmem>>, vector<2x1xf32>
    %16 = vector.broadcast %15 : vector<2x1xf32> to vector<2x128xf32>
    %17 = arith.addf %14, %16 : vector<2x128xf32>
    %18 = vector.extract_strided_slice %17 {offsets = [0, 0], sizes = [1, 128], strides = [1, 1]} : vector<2x128xf32> to vector<1x128xf32>
    %c0_15 = arith.constant 0 : index
    %c0_16 = arith.constant 0 : index
    %19 = vector.load %arg8[%c0_15, %c0_16] : memref<2x128xf32, #tpu.memory_space<vmem>>, vector<1x128xf32>
    tpu.vector_store %arg8[%c0_15, %c0_16], %18 {strides = array<i32>} : memref<2x128xf32, #tpu.memory_space<vmem>>, vector<1x128xf32>,
    %20 = vector.extract_strided_slice %17 {offsets = [1, 0], sizes = [1, 128], strides = [1, 1]} : vector<2x128xf32> to vector<1x128xf32>
    %21 = math.exp %20 : vector<1x128xf32>
    %c1 = arith.constant 1 : index
    %c0_17 = arith.constant 0 : index
    %22 = vector.load %arg8[%c1, %c0_17] : memref<2x128xf32, #tpu.memory_space<vmem>>, vector<1x128xf32>
    tpu.vector_store %arg8[%c1, %c0_17], %21 {strides = array<i32>} : memref<2x128xf32, #tpu.memory_space<vmem>>, vector<1x128xf32>,
    return
  }
  func.func @transform_0(%arg0: i32) -> (i32, i32) {
    %c0_i32 = arith.constant 0 : i32
    %c0_i32_0 = arith.constant 0 : i32
    return %c0_i32, %arg0 : i32, i32
  }
  func.func @transform_1(%arg0: i32) -> (i32, i32) {
    %c0_i32 = arith.constant 0 : i32
    %c0_i32_0 = arith.constant 0 : i32
    %c0_i32_1 = arith.constant 0 : i32
    return %c0_i32, %c0_i32_0 : i32, i32
  }
  func.func @transform_2(%arg0: i32) -> (i32, i32) {
    %c0_i32 = arith.constant 0 : i32
    %c0_i32_0 = arith.constant 0 : i32
    %c0_i32_1 = arith.constant 0 : i32
    return %c0_i32, %c0_i32_0 : i32, i32
  }
  func.func @transform_3(%arg0: i32) -> (i32, i32) {
    %c0_i32 = arith.constant 0 : i32
    %c0_i32_0 = arith.constant 0 : i32
    %c0_i32_1 = arith.constant 0 : i32
    return %c0_i32, %c0_i32_0 : i32, i32
  }
  func.func @transform_4(%arg0: i32) -> (i32, i32) {
    %c0_i32 = arith.constant 0 : i32
    %c0_i32_0 = arith.constant 0 : i32
    %c0_i32_1 = arith.constant 0 : i32
    return %c0_i32, %c0_i32_0 : i32, i32
  }
  func.func @transform_5(%arg0: i32) -> (i32, i32) {
    %c0_i32 = arith.constant 0 : i32
    %c0_i32_0 = arith.constant 0 : i32
    %c0_i32_1 = arith.constant 0 : i32
    return %c0_i32, %c0_i32_0 : i32, i32
  }
  func.func @transform_6(%arg0: i32) -> (i32, i32) {
    %c0_i32 = arith.constant 0 : i32
    %c0_i32_0 = arith.constant 0 : i32
    %c0_i32_1 = arith.constant 0 : i32
    return %c0_i32, %c0_i32_0 : i32, i32
  }
  func.func @transform_7(%arg0: i32) -> (i32, i32) {
    %c0_i32 = arith.constant 0 : i32
    %c0_i32_0 = arith.constant 0 : i32
    return %c0_i32, %arg0 : i32, i32
  }
}

</mosaic_0001>

<bundles_post_ra>
// kernel: actor_forward.1
= control target key start
LH: loop header
LB: loop body
LE: loop exit
PB: predicated region body
PF: predicated region fallthrough
CT: control target
= control target key end

     0   :  { %vm108_vm0 = vcmask 1043456   ;;  %vm83_vm1 = vcmask 31744   ;;  %v327_v2 = vmov 0   ;;  %vm189_vm2 = vcmask 523264   ;;  %s463_s0 = inlined_call_operand.vmem [shape: f32[4,128], index: 0, kind: input, shape index: {}]   ;;  %s464_s1 = inlined_call_operand.vmem [shape: f32[64,4], index: 1, kind: input, shape index: {}]   ;;  %s465_s2 = inlined_call_operand.vmem [shape: f32[64,1], index: 2, kind: input, shape index: {}]   ;;  %s466_s4 = inlined_call_operand.vmem [shape: f32[32,1], index: 4, kind: input, shape index: {}]   ;;  %s467_s6 = inlined_call_operand.vmem [shape: f32[2,1], index: 6, kind: input, shape index: {}]   ;;  %s468_s3 = inlined_call_operand.vmem [shape: f32[32,64], index: 3, kind: input, shape index: {}]   ;;  %s469_s5 = inlined_call_operand.vmem [shape: f32[2,32], index: 5, kind: input, shape index: {}]   ;;  %s470_s7 = inlined_call_operand.vmem [shape: f32[2,128], index: 7, kind: output, shape index: {}]  }
   0x1   :  { %v26_v0 = vld [vmem:[%s463_s0] sm:$0xf]  ;;  %298 = vset.pattern.permute.xlu0 %v327_v2  ;;  %v42_v3 = vld [vmem:[%s465_s2 + $0x38] sm:$0xff]  ;;  %299 = vset.pattern.permute.xlu1 %v327_v2  ;;  %v40_v5 = vld [vmem:[%s465_s2 + $0x28] sm:$0xff]  ;;  %vm242_vm3 = vcmask 261120  }
   0x2   :  { %v31_v1 = vld [vmem:[%s464_s1 + $0x20] sm:$0xff]  ;;  %288 = vmatpush.msk.msra.mxu3 %vm108_vm0, %v26_v0  ;;  %80 = vperm.xlu0 %298, %v42_v3   ;;  %v41_v6 = vld [vmem:[%s465_s2 + $0x30] sm:$0xff]  ;;  %v38_v7 = vld [vmem:[%s465_s2 + $0x18] sm:$0xff] }
   0x3   :  { %v27_v4 = vld [vmem:[%s464_s1] sm:$0xff]  ;;  %279 = vmatmul.msk.f32.vlgmr.msra.gmra.mxu3 %vm83_vm1, %v31_v1  ;;  %274 = vmatpush.msk.msra.mxu0 %vm108_vm0, %v26_v0  ;;  %v32_v8 = vld [vmem:[%s464_s1 + $0x28] sm:$0xff]  ;;  %v37_v11 = vld [vmem:[%s465_s2 + $0x10] sm:$0xff] }
   0x4   :  { %275 = vmatmul.msk.f32.vlgmr.msra.gmra.mxu0 %vm83_vm1, %v27_v4  ;;  %70 = vperm.xlu1 %299, %v40_v5   ;;  %v28_v9 = vld [vmem:[%s464_s1 + $0x8] sm:$0xff]  ;;  %v39_v10 = vld [vmem:[%s465_s2 + $0x20] sm:$0xff]  ;;  %v33_v13 = vld [vmem:[%s464_s1 + $0x30] sm:$0xff] }
   0x5   :  { %300 = vset.pattern.permute.xlu2 %v327_v2  ;;  %v36_v12 = vld [vmem:[%s465_s2 + $0x8] sm:$0xff]  ;;  %v29_v14 = vld [vmem:[%s464_s1 + $0x10] sm:$0xff]  ;;  %v35_v15 = vld [vmem:[%s465_s2] sm:$0xff] }
   0x6   :  { %60 = vperm.xlu2 %300, %v38_v7   ;;  %v168_v16 = vld [vmem:[%s466_s4 + $0x18] sm:$0xff]  ;;  %v167_v17 = vld [vmem:[%s466_s4 + $0x10] sm:$0xff]  ;;  %v166_v20 = vld [vmem:[%s466_s4 + $0x8] sm:$0xff] }
   0x7   :  { %v34_v18 = vld [vmem:[%s464_s1 + $0x38] sm:$0xff]  ;;  %v165_v21 = vld [vmem:[%s466_s4] sm:$0xff]  ;;  %v162_v57 = vld [vmem:[%s468_s3 + $0x8] sm:$0xff] }
   0x8   :  { %v30_v19 = vld [vmem:[%s464_s1 + $0x18] sm:$0xff]  ;;  %v236_v22 = vld [vmem:[%s467_s6] sm:$0x3]  ;;  %v163_v58 = vld [vmem:[%s468_s3 + $0x10] sm:$0xff] }
   0x9   :  { %v161_v54 = vld [vmem:[%s468_s3] sm:$0xff]  ;;  %v164_v55 = vld [vmem:[%s468_s3 + $0x18] sm:$0xff] }
   0xa   :  { %75 = vperm.xlu0 %298, %v41_v6  }
   0xb   :  { %280 = vmatmul.msk.f32.gmra.mxu3 %vm83_vm1, %v32_v8 }
   0xc   :  { %276 = vmatmul.msk.f32.gmra.mxu0 %vm83_vm1, %v28_v9  ;;  %65 = vperm.xlu1 %299, %v39_v10   ;;  %v235_v10 = vld [vmem:[%s469_s5] sm:$0x3] }
   0xe   :  { %55 = vperm.xlu2 %300, %v37_v11  }
  0x12   :  { %50 = vperm.xlu0 %298, %v36_v12  }
  0x13   :  { %281 = vmatmul.msk.f32.gmra.mxu3 %vm83_vm1, %v33_v13 }
  0x14   :  { %277 = vmatmul.msk.f32.gmra.mxu0 %vm83_vm1, %v29_v14  ;;  %45 = vperm.xlu1 %299, %v35_v15  }
  0x16   :  { %186 = vperm.xlu2 %300, %v168_v16  }
  0x1a   :  { %181 = vperm.xlu0 %298, %v167_v17  }
  0x1b   :  { %282 = vmatmul.msk.f32.gmra.mxu3 %vm83_vm1, %v34_v18 }
  0x1c   :  { %278 = vmatmul.msk.f32.gmra.mxu0 %vm83_vm1, %v30_v19  ;;  %176 = vperm.xlu1 %299, %v166_v20  }
  0x1e   :  { %171 = vperm.xlu2 %300, %v165_v21  }
  0x22   :  { %239 = vperm.xlu0 %298, %v236_v22  }
  0x60   :  { %v61_v31 = vpop.permute.xlu2 %60 }
  0x68   :  { %v56_v41 = vpop.permute.xlu2 %55 }
  0x70   :  { %v187_v60 = vpop.permute.xlu2 %186 }
  0x74   :  { %v81_v27 = vpop.permute.xlu0 %80 }
  0x76   :  { %v71_v28 = vpop.permute.xlu1 %70 }
  0x78   :  { %v172_v6 = vpop.permute.xlu2 %171 }
  0x7c   :  { %v76_v32 = vpop.permute.xlu0 %75 }
  0x7e   :  { %v66_v33 = vpop.permute.xlu1 %65 }
  0x81   :  { %v129_v23 = vpop.f32.mrf.mxu0 }
  0x84   :  { %v51_v44 = vpop.permute.xlu0 %50 }
  0x86   :  { %v141_v24 = vpop.f32.mrf.mxu3  ;;  %v46_v45 = vpop.permute.xlu1 %45 }
  0x87   :  { %v142_v39 = vadd.f32 %v141_v24, %v66_v33  ;;  %v130_v49 = vadd.f32 %v129_v23, %v46_v45 }
  0x89   :  { %v132_v26 = vpop.f32.mrf.mxu0 }
  0x8a   :  { %v133_v47 = vadd.f32 %v132_v26, %v51_v44 }
  0x8c   :  { %v182_v1 = vpop.permute.xlu0 %181 }
  0x8e   :  { %v144_v25 = vpop.f32.mrf.mxu3  ;;  %v177_v2 = vpop.permute.xlu1 %176 }
  0x8f   :  { %v145_v37 = vadd.f32 %v144_v25, %v71_v28 }
  0x91   :  { %v135_v30 = vpop.f32.mrf.mxu0 }
  0x92   :  { %v136_v43 = vadd.f32 %v135_v30, %v56_v41 }
  0x94   :  { %v240_v12 = vpop.permute.xlu0 %239 }
  0x96   :  { %v147_v29 = vpop.f32.mrf.mxu3 }
  0x97   :  { %v148_v35 = vadd.f32 %v147_v29, %v76_v32 }
  0x99   :  { %v138_v38 = vpop.f32.mrf.mxu0 }
  0x9a   :  { %v139_v40 = vadd.f32 %v138_v38, %v61_v31 }
  0x9e   :  { %v150_v34 = vpop.f32.mrf.mxu3 }
  0x9f   :  { %v151_v36 = vadd.f32 %v150_v34, %v81_v27 }
  0xa1   :  { %301 = vtanh.f32 %v151_v36 }
  0xa2   :  { %303 = vtanh.f32 %v148_v35 }
  0xa3   :  { %305 = vtanh.f32 %v145_v37 }
  0xa4   :  { %307 = vtanh.f32 %v142_v39 }
  0xa5   :  { %309 = vtanh.f32 %v139_v40 }
  0xa6   :  { %311 = vtanh.f32 %v136_v43 }
  0xa7   :  { %v302_v42 = vpop.eup %301  ;;  %313 = vtanh.f32 %v133_v47 }
  0xa8   :  { %210 = vmatpush.msra.mxu1 %v302_v42  ;;  %289 = vmatpush.msra.mxu2 %v302_v42  ;;  %v304_v46 = vpop.eup %303  ;;  %315 = vtanh.f32 %v130_v49 }
  0xa9   :  { %v306_v48 = vpop.eup %305 }
  0xaa   :  { %211 = vmatpush.msra.mxu1 %v304_v46  ;;  %290 = vmatpush.msra.mxu2 %v304_v46  ;;  %v308_v50 = vpop.eup %307 }
  0xab   :  { %v310_v51 = vpop.eup %309 }
  0xac   :  { %212 = vmatpush.msra.mxu1 %v306_v48  ;;  %291 = vmatpush.msra.mxu2 %v306_v48  ;;  %v312_v52 = vpop.eup %311 }
  0xad   :  { %v314_v53 = vpop.eup %313 }
  0xae   :  { %213 = vmatpush.msra.mxu1 %v308_v50  ;;  %292 = vmatpush.msra.mxu2 %v308_v50  ;;  %v316_v56 = vpop.eup %315 }
  0xb0   :  { %214 = vmatpush.msra.mxu1 %v310_v51  ;;  %293 = vmatpush.msra.mxu2 %v310_v51 }
  0xb2   :  { %215 = vmatpush.msra.mxu1 %v312_v52  ;;  %294 = vmatpush.msra.mxu2 %v312_v52 }
  0xb4   :  { %216 = vmatpush.msra.mxu1 %v314_v53  ;;  %295 = vmatpush.msra.mxu2 %v314_v53 }
  0xb6   :  { %217 = vmatpush.msra.mxu1 %v316_v56  ;;  %296 = vmatpush.msra.mxu2 %v316_v56 }
  0xb7   :  { %283 = vmatmul.msk.f32.vlgmr.msra.gmra.mxu1 %vm189_vm2, %v161_v54  ;;  %286 = vmatmul.msk.f32.vlgmr.msra.gmra.mxu2 %vm189_vm2, %v164_v55 }
  0xbf   :  { %284 = vmatmul.msk.f32.gmra.mxu1 %vm189_vm2, %v162_v57 }
  0xc7   :  { %285 = vmatmul.msk.f32.gmra.mxu1 %vm189_vm2, %v163_v58 }
 0x134   :  { %v219_v59 = vpop.f32.mrf.mxu1 }
 0x135   :  { %v220_v7 = vadd.f32 %v219_v59, %v172_v6 }
 0x13a   :  { %v228_v61 = vpop.f32.mrf.mxu2 }
 0x13b   :  { %v229_v62 = vadd.f32 %v228_v61, %v187_v60 }
 0x13c   :  { %v222_v63 = vpop.f32.mrf.mxu1 }
 0x13d   :  { %317 = vtanh.f32 %v229_v62  ;;  %v223_v4 = vadd.f32 %v222_v63, %v177_v2 }
 0x143   :  { %v318_v0 = vpop.eup %317 }
 0x144   :  { %v225_v3 = vpop.f32.mrf.mxu1  ;;  %258 = vmatpush.msrb.mxu2 %v318_v0 }
 0x145   :  { %v226_v5 = vadd.f32 %v225_v3, %v182_v1 }
 0x147   :  { %319 = vtanh.f32 %v226_v5 }
 0x148   :  { %321 = vtanh.f32 %v223_v4 }
 0x149   :  { %323 = vtanh.f32 %v220_v7 }
 0x14d   :  { %v320_v8 = vpop.eup %319 }
 0x14e   :  { %259 = vmatpush.msrb.mxu2 %v320_v8  ;;  %v322_v9 = vpop.eup %321 }
 0x14f   :  { %v324_v11 = vpop.eup %323 }
 0x150   :  { %260 = vmatpush.msrb.mxu2 %v322_v9 }
 0x152   :  { %261 = vmatpush.msrb.mxu2 %v324_v11 }
 0x153   :  { %287 = vmatmul.msk.f32.vlgmr.msrb.gmra.mxu2 %vm242_vm3, %v235_v10 }
 0x1d6   :  { %v263_v13 = vpop.f32.mrf.mxu2 }
 0x1d7   :  { %v264_v14 = vadd.f32 %v263_v13, %v240_v12 }
 0x1d9   :  { %266 = vst [vmem:[%s470_s7] sm:$0x1] %v264_v14  ;;  %v267_v15 = vmul.f32 1.442695, %v264_v14 }
 0x1db   :  { %325 = vpow2.f32 %v267_v15 }
 0x1e1   :  { %v326_v16 = vpop.eup %325 }
 0x1e2   :  { %269 = vst [vmem:[%s470_s7] sm:$0x2] %v326_v16 }

</bundles_post_ra>
